<compile_context>
chip_gen: v5e
topology: v5e:2x2
jax: 0.10.0
libtpu: 0.0.40
codegen_flags: <defaults>
</compile_context>

<pallas_src>
import jax
import jax.numpy as jnp
from jax.experimental import pallas as pl
from jax.experimental.pallas import tpu as pltpu

INPUT_SIZE = 5
HIDDEN_SIZE = 10
OUTPUT_SIZE = 2

HID_PAD = 128        # lane-dense hidden dim (weights are tiny and VMEM-resident;
                     # padded hidden lanes are exactly 0 after ReLU(0 + 0))
MAX_TILE_B = 4096    # VMEM-safe on v5e/v6e/v7x with default scoped-VMEM limits


def _round_up(x, m):
    return ((x + m - 1) // m) * m


def mlp_kernel(x_ref, w1_ref, b1_ref, w2_ref, b2_ref, o_ref):
    x = x_ref[...]                                   # (tb, INPUT_SIZE), f32 or bf16
    w1 = w1_ref[...]                                 # (INPUT_SIZE, HID_PAD)
    w2 = w2_ref[...]                                 # (HID_PAD, OUTPUT_SIZE)
    b1 = b1_ref[...]                                 # (1, HID_PAD), f32
    b2 = b2_ref[...]                                 # (1, OUTPUT_SIZE), f32

    # Layer 1: MXU matmul (K=5 padded internally), f32 accumulation, f32 bias + ReLU.
    h = jnp.dot(x, w1, preferred_element_type=jnp.float32) + b1
    h = jnp.maximum(h, 0.0)

    # Layer 2: feed MXU in the weights' dtype (bf16 or f32), accumulate in f32.
    y = jnp.dot(h.astype(w2.dtype), w2, preferred_element_type=jnp.float32) + b2
    o_ref[...] = y.astype(o_ref.dtype)               # narrow (tb, 2) store


def simple_neural_network(x, w1, b1, w2, b2, *, tile_b=2048, compute_dtype=jnp.float32):
    """Forward pass equivalent to the PyTorch SimpleNeuralNetwork.

    Args:
      x:  (B, INPUT_SIZE) float32
      w1: (INPUT_SIZE, HIDDEN_SIZE) float32   (PyTorch layer1.weight.T)
      b1: (HIDDEN_SIZE,) float32
      w2: (HIDDEN_SIZE, OUTPUT_SIZE) float32  (PyTorch layer2.weight.T)
      b2: (OUTPUT_SIZE,) float32
      tile_b: batch tile size (rounded to the sublane-packing multiple, capped
              so the pipeline fits default scoped-VMEM on all TPU generations)
      compute_dtype: dtype for x / weights fed to the MXU (f32, or bf16 to halve
              HBM streaming bytes on v6e/v7x); accumulation, bias add and ReLU
              stay in f32.
    Returns:
      (B, OUTPUT_SIZE) float32
    """
    B = x.shape[0]
    cdt = compute_dtype

    # Batch tile: aligned to the packed sublane count (16 for bf16, 8 for f32),
    # capped for default scoped-VMEM limits. Ragged last block is handled by
    # Pallas (masked output writeback), so no host batch padding is needed.
    align = 16 if cdt == jnp.bfloat16 else 8
    tb = _round_up(min(int(tile_b), max(B, 1)), align)
    tb = min(tb, MAX_TILE_B)
    grid = (pl.cdiv(B, tb),)

    # x streams as-is (no zero-pad pass); cast only when bf16 streaming is requested.
    xs = x if x.dtype == cdt else x.astype(cdt)

    # Tiny weight/bias pads (hidden dim only) done once; VMEM-resident thereafter.
    w1p = jnp.zeros((INPUT_SIZE, HID_PAD), cdt).at[:, :HIDDEN_SIZE].set(w1.astype(cdt))
    b1p = jnp.zeros((1, HID_PAD), jnp.float32).at[0, :HIDDEN_SIZE].set(b1)
    w2p = jnp.zeros((HID_PAD, OUTPUT_SIZE), cdt).at[:HIDDEN_SIZE, :].set(w2.astype(cdt))
    b2p = b2.reshape(1, OUTPUT_SIZE).astype(jnp.float32)

    x_bytes = jnp.dtype(cdt).itemsize
    cost = pl.CostEstimate(
        flops=2 * B * (INPUT_SIZE * HIDDEN_SIZE + HIDDEN_SIZE * OUTPUT_SIZE),
        transcendentals=0,
        bytes_accessed=(B * INPUT_SIZE * x_bytes            # x read
                        + B * OUTPUT_SIZE * 4                # output write
                        + (INPUT_SIZE * HID_PAD + HID_PAD * OUTPUT_SIZE) * x_bytes
                        + (HID_PAD + OUTPUT_SIZE) * 4),      # resident weights/biases
    )

    out = pl.pallas_call(
        mlp_kernel,
        out_shape=jax.ShapeDtypeStruct((B, OUTPUT_SIZE), jnp.float32),
        grid=grid,
        in_specs=[
            pl.BlockSpec((tb, INPUT_SIZE), lambda i: (i, 0)),       # x: tiled over batch
            pl.BlockSpec((INPUT_SIZE, HID_PAD), lambda i: (0, 0)),  # w1: VMEM-resident
            pl.BlockSpec((1, HID_PAD), lambda i: (0, 0)),           # b1: VMEM-resident
            pl.BlockSpec((HID_PAD, OUTPUT_SIZE), lambda i: (0, 0)), # w2: VMEM-resident
            pl.BlockSpec((1, OUTPUT_SIZE), lambda i: (0, 0)),       # b2: VMEM-resident
        ],
        out_specs=pl.BlockSpec((tb, OUTPUT_SIZE), lambda i: (i, 0)),
        compiler_params=pltpu.CompilerParams(
            dimension_semantics=("parallel",),  # shard batch tiles across TCs (v7x)
        ),
        cost_estimate=cost,
    )(xs, w1p, b1p, w2p, b2p)

    return out


def _reference(x, w1, b1, w2, b2):
    return jnp.maximum(x @ w1 + b1, 0.0) @ w2 + b2


if __name__ == "__main__":
    key = jax.random.PRNGKey(0)
    k_x, k_w1, k_b1, k_w2, k_b2, k_x2, k_x3 = jax.random.split(key, 7)

    # Deterministic parameter init (uniform like PyTorch's default Linear init bounds).
    bound1 = 1.0 / (INPUT_SIZE ** 0.5)
    w1 = jax.random.uniform(k_w1, (INPUT_SIZE, HIDDEN_SIZE), jnp.float32, -bound1, bound1)
    b1 = jax.random.uniform(k_b1, (HIDDEN_SIZE,), jnp.float32, -bound1, bound1)
    bound2 = 1.0 / (HIDDEN_SIZE ** 0.5)
    w2 = jax.random.uniform(k_w2, (HIDDEN_SIZE, OUTPUT_SIZE), jnp.float32, -bound2, bound2)
    b2 = jax.random.uniform(k_b2, (OUTPUT_SIZE,), jnp.float32, -bound2, bound2)

    # --- Run 1: small batch, f32, single grid step ---
    batch = 8
    x = jax.random.normal(k_x, (batch, INPUT_SIZE), dtype=jnp.float32)
    out = simple_neural_network(x, w1, b1, w2, b2)
    jax.block_until_ready(out)
    ref = _reference(x, w1, b1, w2, b2)
    assert out.shape == (batch, OUTPUT_SIZE)
    assert jnp.allclose(out, ref, atol=1e-5, rtol=1e-5)

    # --- Run 2: batch not a multiple of the tile (ragged last block), multi-step grid ---
    batch2 = 300
    x2 = jax.random.normal(k_x2, (batch2, INPUT_SIZE), dtype=jnp.float32)
    out2 = simple_neural_network(x2, w1, b1, w2, b2, tile_b=128)
    jax.block_until_ready(out2)
    ref2 = _reference(x2, w1, b1, w2, b2)
    assert out2.shape == (batch2, OUTPUT_SIZE)
    assert jnp.allclose(out2, ref2, atol=1e-5, rtol=1e-5)

    # --- Run 3: bf16 streaming path (halves HBM bytes on v6e/v7x), f32 accumulation ---
    batch3 = 256
    x3 = jax.random.normal(k_x3, (batch3, INPUT_SIZE), dtype=jnp.float32)
    out3 = simple_neural_network(x3, w1, b1, w2, b2, tile_b=128, compute_dtype=jnp.bfloat16)
    jax.block_until_ready(out3)
    ref3 = _reference(x3, w1, b1, w2, b2)
    assert out3.shape == (batch3, OUTPUT_SIZE)
    assert jnp.allclose(out3, ref3, atol=3e-2, rtol=3e-2)  # bf16 input tolerance

    print("KERNEL_OK")
</pallas_src>

<mosaic_0001>
module attributes {stable_mosaic.version = 11 : i64} {
  func.func @mlp_kernel(%arg0: i32, %arg1: memref<8x5xf32, #tpu.memory_space<vmem>>, %arg2: memref<5x128xf32, #tpu.memory_space<vmem>>, %arg3: memref<1x128xf32, #tpu.memory_space<vmem>>, %arg4: memref<128x2xf32, #tpu.memory_space<vmem>>, %arg5: memref<1x2xf32, #tpu.memory_space<vmem>>, %arg6: memref<8x2xf32, #tpu.memory_space<vmem>>) attributes {dimension_semantics = [#tpu.dimension_semantics<parallel>], iteration_bounds = array<i64: 1>, scalar_prefetch = 0 : i64, scratch_operands = 0 : i64, tpu.core_type = #tpu.core_type<tc>, window_params = [{transform_indices = @transform_0, window_bounds = array<i64: 8, 5>}, {pipeline_mode = #tpu.pipeline_mode<synchronous>, transform_indices = @transform_1, window_bounds = array<i64: 5, 128>}, {pipeline_mode = #tpu.pipeline_mode<synchronous>, transform_indices = @transform_2, window_bounds = array<i64: 1, 128>}, {pipeline_mode = #tpu.pipeline_mode<synchronous>, transform_indices = @transform_3, window_bounds = array<i64: 128, 2>}, {pipeline_mode = #tpu.pipeline_mode<synchronous>, transform_indices = @transform_4, window_bounds = array<i64: 1, 2>}, {transform_indices = @transform_5, window_bounds = array<i64: 8, 2>}]} {
    %c0 = arith.constant 0 : index
    %c0_0 = arith.constant 0 : index
    %0 = vector.load %arg1[%c0, %c0_0] : memref<8x5xf32, #tpu.memory_space<vmem>>, vector<8x5xf32>
    %c0_1 = arith.constant 0 : index
    %c0_2 = arith.constant 0 : index
    %1 = vector.load %arg2[%c0_1, %c0_2] : memref<5x128xf32, #tpu.memory_space<vmem>>, vector<5x128xf32>
    %c0_3 = arith.constant 0 : index
    %c0_4 = arith.constant 0 : index
    %2 = vector.load %arg4[%c0_3, %c0_4] : memref<128x2xf32, #tpu.memory_space<vmem>>, vector<128x2xf32>
    %c0_5 = arith.constant 0 : index
    %c0_6 = arith.constant 0 : index
    %3 = vector.load %arg3[%c0_5, %c0_6] : memref<1x128xf32, #tpu.memory_space<vmem>>, vector<1x128xf32>
    %c0_7 = arith.constant 0 : index
    %c0_8 = arith.constant 0 : index
    %4 = vector.load %arg5[%c0_7, %c0_8] : memref<1x2xf32, #tpu.memory_space<vmem>>, vector<1x2xf32>
    %cst = arith.constant dense<0.000000e+00> : vector<8x128xf32>
    %5 = tpu.matmul %0, %1, %cst {dimension_numbers = #tpu.dot_dimension_numbers<[1], [0], [0], [1], [0, 0, 1, 1], [], []>} : vector<8x5xf32>, vector<5x128xf32>, vector<8x128xf32> -> vector<8x128xf32>
    %6 = vector.broadcast %3 : vector<1x128xf32> to vector<8x128xf32>
    %7 = arith.addf %5, %6 : vector<8x128xf32>
    %cst_9 = arith.constant 0.000000e+00 : f32
    %8 = vector.broadcast %cst_9 : f32 to vector<8x128xf32>
    %9 = arith.maximumf %7, %8 : vector<8x128xf32>
    %cst_10 = arith.constant dense<0.000000e+00> : vector<8x2xf32>
    %10 = tpu.matmul %9, %2, %cst_10 {dimension_numbers = #tpu.dot_dimension_numbers<[1], [0], [0], [1], [0, 0, 1, 1], [], []>} : vector<8x128xf32>, vector<128x2xf32>, vector<8x2xf32> -> vector<8x2xf32>
    %11 = vector.broadcast %4 : vector<1x2xf32> to vector<8x2xf32>
    %12 = arith.addf %10, %11 : vector<8x2xf32>
    %c0_11 = arith.constant 0 : index
    %c0_12 = arith.constant 0 : index
    %13 = vector.load %arg6[%c0_11, %c0_12] : memref<8x2xf32, #tpu.memory_space<vmem>>, vector<8x2xf32>
    tpu.vector_store %arg6[%c0_11, %c0_12], %12 {strides = array<i32>} : memref<8x2xf32, #tpu.memory_space<vmem>>, vector<8x2xf32>,
    return
  }
  func.func @transform_0(%arg0: i32) -> (i32, i32) {
    %c0_i32 = arith.constant 0 : i32
    %c0_i32_0 = arith.constant 0 : i32
    return %arg0, %c0_i32 : i32, i32
  }
  func.func @transform_1(%arg0: i32) -> (i32, i32) {
    %c0_i32 = arith.constant 0 : i32
    %c0_i32_0 = arith.constant 0 : i32
    %c0_i32_1 = arith.constant 0 : i32
    return %c0_i32, %c0_i32_0 : i32, i32
  }
  func.func @transform_2(%arg0: i32) -> (i32, i32) {
    %c0_i32 = arith.constant 0 : i32
    %c0_i32_0 = arith.constant 0 : i32
    %c0_i32_1 = arith.constant 0 : i32
    return %c0_i32, %c0_i32_0 : i32, i32
  }
  func.func @transform_3(%arg0: i32) -> (i32, i32) {
    %c0_i32 = arith.constant 0 : i32
    %c0_i32_0 = arith.constant 0 : i32
    %c0_i32_1 = arith.constant 0 : i32
    return %c0_i32, %c0_i32_0 : i32, i32
  }
  func.func @transform_4(%arg0: i32) -> (i32, i32) {
    %c0_i32 = arith.constant 0 : i32
    %c0_i32_0 = arith.constant 0 : i32
    %c0_i32_1 = arith.constant 0 : i32
    return %c0_i32, %c0_i32_0 : i32, i32
  }
  func.func @transform_5(%arg0: i32) -> (i32, i32) {
    %c0_i32 = arith.constant 0 : i32
    %c0_i32_0 = arith.constant 0 : i32
    return %arg0, %c0_i32 : i32, i32
  }
}

</mosaic_0001>

<bundles_post_ra>
// kernel: tpu_custom_call.1
= control target key start
LH: loop header
LB: loop body
LE: loop exit
PB: predicated region body
PF: predicated region fallthrough
CT: control target
= control target key end

     0   :  { %vm47_vm0 = vcmask 1044480   ;;  %vm43_vm1 = vcmask 39936   ;;  %vm95_vm2 = vcmask 15360   ;;  %s198_s1 = inlined_call_operand.vmem [shape: f32[5,128], index: 1, kind: input, shape index: {}]   ;;  %s199_s0 = inlined_call_operand.vmem [shape: f32[8,5], index: 0, kind: input, shape index: {}]   ;;  %s200_s3 = inlined_call_operand.vmem [shape: f32[128,2], index: 3, kind: input, shape index: {}]   ;;  %s201_s2 = inlined_call_operand.vmem [shape: f32[1,128], index: 2, kind: input, shape index: {}]   ;;  %s202_s4 = inlined_call_operand.vmem [shape: f32[1,2], index: 4, kind: input, shape index: {}]   ;;  %s203_s5 = inlined_call_operand.vmem [shape: f32[8,2], index: 5, kind: output, shape index: {}]  }
   0x1   :  { %v21_v0 = vld [vmem:[%s198_s1] sm:$0x1f]  ;;  %v37_v2 = vld [vmem:[%s200_s3 + $0x78] sm:$0xff]  ;;  %v36_v3 = vld [vmem:[%s200_s3 + $0x70] sm:$0xff] }
   0x2   :  { %v20_v1 = vld [vmem:[%s199_s0] sm:$0xff]  ;;  %101 = vmatpush.msk.msra.mxu0 %vm47_vm0, %v21_v0  ;;  %75 = vmatpush.msra.mxu1 %v37_v2  ;;  %v35_v4 = vld [vmem:[%s200_s3 + $0x68] sm:$0xff]  ;;  %v33_v6 = vld [vmem:[%s200_s3 + $0x58] sm:$0xff] }
   0x3   :  { %102 = vmatmul.msk.f32.vlgmr.msra.gmra.mxu0 %vm43_vm1, %v20_v1  ;;  %v34_v5 = vld [vmem:[%s200_s3 + $0x60] sm:$0xff]  ;;  %v32_v7 = vld [vmem:[%s200_s3 + $0x50] sm:$0xff]  ;;  %v31_v8 = vld [vmem:[%s200_s3 + $0x48] sm:$0xff] }
   0x4   :  { %76 = vmatpush.msra.mxu1 %v36_v3  ;;  %v30_v9 = vld [vmem:[%s200_s3 + $0x40] sm:$0xff]  ;;  %v29_v10 = vld [vmem:[%s200_s3 + $0x38] sm:$0xff]  ;;  %v28_v11 = vld [vmem:[%s200_s3 + $0x30] sm:$0xff] }
   0x5   :  { %v27_v12 = vld [vmem:[%s200_s3 + $0x28] sm:$0xff]  ;;  %v26_v13 = vld [vmem:[%s200_s3 + $0x20] sm:$0xff]  ;;  %v25_v14 = vld [vmem:[%s200_s3 + $0x18] sm:$0xff] }
   0x6   :  { %77 = vmatpush.msra.mxu1 %v35_v4  ;;  %v24_v15 = vld [vmem:[%s200_s3 + $0x10] sm:$0xff]  ;;  %v23_v16 = vld [vmem:[%s200_s3 + $0x8] sm:$0xff]  ;;  %v22_v17 = vld [vmem:[%s200_s3] sm:$0xff] }
   0x7   :  { %v103_v18 = vld [vmem:[%s201_s2] ss:$0 sm:$0xff] }
   0x8   :  { %78 = vmatpush.msra.mxu1 %v34_v5  ;;  %v104_v22 = vld [vmem:[%s202_s4] ss:$0 sm:$0xff] }
   0xa   :  { %79 = vmatpush.msra.mxu1 %v33_v6 }
   0xc   :  { %80 = vmatpush.msra.mxu1 %v32_v7 }
   0xe   :  { %81 = vmatpush.msra.mxu1 %v31_v8 }
  0x10   :  { %82 = vmatpush.msra.mxu1 %v30_v9 }
  0x12   :  { %83 = vmatpush.msra.mxu1 %v29_v10 }
  0x14   :  { %84 = vmatpush.msra.mxu1 %v28_v11 }
  0x16   :  { %85 = vmatpush.msra.mxu1 %v27_v12 }
  0x18   :  { %86 = vmatpush.msra.mxu1 %v26_v13 }
  0x1a   :  { %87 = vmatpush.msra.mxu1 %v25_v14 }
  0x1c   :  { %88 = vmatpush.msra.mxu1 %v24_v15 }
  0x1e   :  { %89 = vmatpush.msra.mxu1 %v23_v16 }
  0x20   :  { %90 = vmatpush.msra.mxu1 %v22_v17 }
  0x80   :  { %v68_v19 = vpop.f32.mrf.mxu0 }
  0x81   :  { %v69_v20 = vadd.f32 %v103_v18, %v68_v19 }
  0x83   :  { %v71_v21 = vmax.f32 %v69_v20, 0.0 }
  0x85   :  { %91 = vmatmul.f32.vlgmr.msra.gmra.mxu1 %v71_v21 }
 0x102   :  { %v92_v23 = vpop.f32.mrf.mxu1 }
 0x103   :  { %v93_v24 = vadd.f32 %v104_v22, %v92_v23 }
 0x105   :  { %96 = vst.msk [vmem:[%s203_s5] sm:$0xff] %vm95_vm2, %v93_v24 }

</bundles_post_ra>
